<compile_context>
chip_gen: v6e
topology: v6e:2x2x1
jax: 0.10.0
libtpu: 0.0.40
codegen_flags: <defaults>
</compile_context>

<pallas_src>
import functools
import math

import numpy as np
import jax
import jax.numpy as jnp
from jax.experimental import pallas as pl
from jax.experimental.pallas import tpu as pltpu


def _sinusoidal_kernel(t_ref, f_ref, p_ref, o_ref):
    # out = sin(t * freq + phase); single full-width lane-dense store.
    o_ref[...] = jnp.sin(t_ref[...] * f_ref[...] + p_ref[...]).astype(o_ref.dtype)


def _round_up(x, m):
    return ((x + m - 1) // m) * m


def sinusoidal_position_embeddings(time, dim, *, block_rows=None,
                                   out_dtype=jnp.float32,
                                   vmem_budget_bytes=24 * 1024 * 1024):
    """Pallas TPU implementation of SinusoidalPositionEmbeddings.forward.

    time: (B,) timesteps.  Returns (B, 2*(dim//2)) embeddings, identical to
    torch.cat((sin, cos), -1) -- i.e. (B, dim) for even dim.
    """
    B = time.shape[0]
    half = dim // 2
    out_dim = 2 * half
    # NOTE: dim == 2 / 3 gives half - 1 == 0 and divides by zero exactly like
    # the PyTorch module; no extra guard to keep semantics identical.
    scale = math.log(10000.0) / (half - 1)
    freqs_half = np.exp(np.arange(half, dtype=np.float32) * -scale)
    freqs = np.concatenate([freqs_half, freqs_half]).astype(np.float32)      # (out_dim,)
    phase = np.concatenate([np.zeros(half, np.float32),                      # sin half
                            np.full(half, np.pi / 2.0, np.float32)])         # cos = sin(x+pi/2)

    t = time.astype(jnp.float32).reshape(B)

    lane_dense = (out_dim < 128) and (128 % out_dim == 0)
    if lane_dense:
        # Pack g batch rows per 128-lane output row (row-major identical memory).
        g = 128 // out_dim
        lanes = 128
        Bp = _round_up(max(B, 1), 8 * g)
        if Bp != B:
            t = jnp.pad(t, (0, Bp - B))
        R = Bp // g
        t2d = jnp.broadcast_to(t[:, None], (Bp, out_dim)).reshape(R, lanes)
        f_row = jnp.asarray(np.tile(freqs, g)[None, :])
        p_row = jnp.asarray(np.tile(phase, g)[None, :])
    else:
        lanes = out_dim
        Bp = _round_up(max(B, 1), 8)
        if Bp != B:
            t = jnp.pad(t, (0, Bp - B))
        R = Bp
        t2d = t[:, None]                                    # (R, 1), lane-broadcast in kernel
        f_row = jnp.asarray(freqs[None, :])
        p_row = jnp.asarray(phase[None, :])

    in_cols = t2d.shape[1]
    out_bytes = np.dtype(out_dtype).itemsize
    row_bytes = in_cols * 4 + lanes * out_bytes             # one row of input + output

    if block_rows is None:
        # Biggest row tile whose double-buffered in+out working set fits the budget.
        block_rows = max(8, min(8192, (vmem_budget_bytes // (2 * row_bytes)) // 8 * 8))
    rb = max(8, min((block_rows // 8) * 8, _round_up(R, 8)))
    # Ensure >= 2 grid steps for large problems so the "parallel" axis can be
    # split across v7x's two TensorCores.
    if R >= 128 and pl.cdiv(R, rb) < 2:
        rb = _round_up(pl.cdiv(R, 2), 8)
    nr = pl.cdiv(R, rb)
    Rp = nr * rb
    if Rp != R:
        t2d = jnp.pad(t2d, ((0, Rp - R), (0, 0)))

    vmem_needed = 2 * rb * row_bytes + 4 * lanes * 4        # double-buffered tiles + consts
    vmem_limit = int(min(64 * 1024 * 1024, max(32 * 1024 * 1024, vmem_needed * 3 // 2)))

    out = pl.pallas_call(
        _sinusoidal_kernel,
        out_shape=jax.ShapeDtypeStruct((Rp, lanes), out_dtype),
        grid_spec=pltpu.PrefetchScalarGridSpec(
            num_scalar_prefetch=0,
            grid=(nr,),
            in_specs=[
                pl.BlockSpec((rb, in_cols), lambda r: (r, 0)),
                pl.BlockSpec((1, lanes), lambda r: (0, 0)),
                pl.BlockSpec((1, lanes), lambda r: (0, 0)),
            ],
            out_specs=pl.BlockSpec((rb, lanes), lambda r: (r, 0)),
        ),
        compiler_params=pltpu.CompilerParams(
            dimension_semantics=("parallel",),
            vmem_limit_bytes=vmem_limit),
    )(t2d, f_row, p_row)

    if lane_dense:
        return out.reshape(-1, out_dim)[:B]
    return out[:B]


if __name__ == "__main__":
    B, dim = 8, 32                       # small shapes consistent with the module

    key = jax.random.PRNGKey(0)
    time = jax.random.uniform(key, (B,), jnp.float32, minval=0.0, maxval=1000.0)

    fn = jax.jit(functools.partial(sinusoidal_position_embeddings, dim=dim))
    out = jax.block_until_ready(fn(time))

    # pure-JAX reference with PyTorch semantics
    half_dim = dim // 2
    scale = math.log(10000.0) / (half_dim - 1)
    freqs = jnp.exp(jnp.arange(half_dim, dtype=jnp.float32) * -scale)
    args = time[:, None] * freqs[None, :]
    ref = jnp.concatenate([jnp.sin(args), jnp.cos(args)], axis=-1)

    assert out.shape == (B, dim), out.shape
    np.testing.assert_allclose(np.asarray(out), np.asarray(ref),
                               rtol=2e-3, atol=2e-3)
    print("KERNEL_OK")
</pallas_src>

<mosaic_0001>
module attributes {stable_mosaic.version = 11 : i64} {
  func.func @_sinusoidal_kernel(%arg0: i32, %arg1: memref<8x128xf32, #tpu.memory_space<vmem>>, %arg2: memref<1x128xf32, #tpu.memory_space<vmem>>, %arg3: memref<1x128xf32, #tpu.memory_space<vmem>>, %arg4: memref<8x128xf32, #tpu.memory_space<vmem>>) attributes {dimension_semantics = [#tpu.dimension_semantics<parallel>], iteration_bounds = array<i64: 1>, scalar_prefetch = 0 : i64, scratch_operands = 0 : i64, tpu.core_type = #tpu.core_type<tc>, window_params = [{transform_indices = @transform_0, window_bounds = array<i64: 8, 128>}, {pipeline_mode = #tpu.pipeline_mode<synchronous>, transform_indices = @transform_1, window_bounds = array<i64: 1, 128>}, {pipeline_mode = #tpu.pipeline_mode<synchronous>, transform_indices = @transform_2, window_bounds = array<i64: 1, 128>}, {transform_indices = @transform_3, window_bounds = array<i64: 8, 128>}]} {
    %c0 = arith.constant 0 : index
    %c0_0 = arith.constant 0 : index
    %0 = vector.load %arg1[%c0, %c0_0] : memref<8x128xf32, #tpu.memory_space<vmem>>, vector<8x128xf32>
    %c0_1 = arith.constant 0 : index
    %c0_2 = arith.constant 0 : index
    %1 = vector.load %arg2[%c0_1, %c0_2] : memref<1x128xf32, #tpu.memory_space<vmem>>, vector<1x128xf32>
    %2 = vector.broadcast %1 : vector<1x128xf32> to vector<8x128xf32>
    %3 = arith.mulf %0, %2 : vector<8x128xf32>
    %c0_3 = arith.constant 0 : index
    %c0_4 = arith.constant 0 : index
    %4 = vector.load %arg3[%c0_3, %c0_4] : memref<1x128xf32, #tpu.memory_space<vmem>>, vector<1x128xf32>
    %5 = vector.broadcast %4 : vector<1x128xf32> to vector<8x128xf32>
    %6 = arith.addf %3, %5 : vector<8x128xf32>
    %7 = math.sin %6 : vector<8x128xf32>
    %c0_5 = arith.constant 0 : index
    %c0_6 = arith.constant 0 : index
    %8 = vector.load %arg4[%c0_5, %c0_6] : memref<8x128xf32, #tpu.memory_space<vmem>>, vector<8x128xf32>
    tpu.vector_store %arg4[%c0_5, %c0_6], %7 {strides = array<i32>} : memref<8x128xf32, #tpu.memory_space<vmem>>, vector<8x128xf32>,
    return
  }
  func.func @transform_0(%arg0: i32) -> (i32, i32) {
    %c0_i32 = arith.constant 0 : i32
    %c0_i32_0 = arith.constant 0 : i32
    return %arg0, %c0_i32 : i32, i32
  }
  func.func @transform_1(%arg0: i32) -> (i32, i32) {
    %c0_i32 = arith.constant 0 : i32
    %c0_i32_0 = arith.constant 0 : i32
    %c0_i32_1 = arith.constant 0 : i32
    return %c0_i32, %c0_i32_0 : i32, i32
  }
  func.func @transform_2(%arg0: i32) -> (i32, i32) {
    %c0_i32 = arith.constant 0 : i32
    %c0_i32_0 = arith.constant 0 : i32
    %c0_i32_1 = arith.constant 0 : i32
    return %c0_i32, %c0_i32_0 : i32, i32
  }
  func.func @transform_3(%arg0: i32) -> (i32, i32) {
    %c0_i32 = arith.constant 0 : i32
    %c0_i32_0 = arith.constant 0 : i32
    return %arg0, %c0_i32 : i32, i32
  }
}

</mosaic_0001>

<bundles_post_ra>
// kernel: sinusoidal_position_embeddings.1
= control target key start
LH: loop header
LB: loop body
LE: loop exit
PB: predicated region body
PF: predicated region fallthrough
CT: control target
= control target key end

     0   :  { %v160_v16 = vmov 683565275   ;;  %v161_v18 = vmov 2475754826   ;;  %v162_v20 = vmov 2131351028   ;;  %s219_s0 = inlined_call_operand.vmem [shape: f32[8,128], index: 0, kind: input, shape index: {}]   ;;  %s220_s1 = inlined_call_operand.vmem [shape: f32[1,128], index: 1, kind: input, shape index: {}]   ;;  %s221_s2 = inlined_call_operand.vmem [shape: f32[1,128], index: 2, kind: input, shape index: {}]   ;;  %s222_s3 = inlined_call_operand.vmem [shape: f32[8,128], index: 3, kind: output, shape index: {}]  }
   0x1   :  { %v14_v0 = vld [vmem:[%s219_s0] sm:$0xff]  ;;  %v163_v22 = vmov 2102212464   ;;  %v164_v24 = vmov 920167782  }
   0x2   :  { %v140_v1 = vld [vmem:[%s220_s1] ss:$0 sm:$0xff]  ;;  %v165_v31 = vmov 1326507024  }
   0x3   :  { %v141_v2 = vld [vmem:[%s221_s2] ss:$0 sm:$0xff]  ;;  %v22_v3 = vmul.f32 %v140_v1, %v14_v0 }
   0x5   :  { %v195_v4 = vadd.f32 %v141_v2, %v22_v3 }
   0x7   :  { %v34_v5 = vand.u32 2139095040, %v195_v4  ;;  %v31_v7 = vand.u32 2147483647, %v195_v4  ;;  %vm33_vm7 = vcmp.lt.s32.totalorder %v195_v4, 0  ;;  %vm123_vm12 = vweird.f32 %v195_v4 }
   0x9   :  { %v35_v6 = vshrl.u32 %v34_v5, 23  ;;  %v38_v10 = vand.u32 8388607, %v31_v7  ;;  %vm32_vm8 = vcmp.le.f32.partialorder %v31_v7, 0.7853982 }
   0xb   :  { %v142_v8 = vadd.s32 4294967169, %v35_v6  ;;  %v39_v13 = vor.u32 8388608, %v38_v10 }
   0xd   :  { %v41_v9 = vadd.s32 1, %v142_v8  ;;  %v79_v33 = vshll.u32 %v39_v13, 8 }
   0xf   :  { %vm42_vm0 = vcmp.gt.s32.totalorder %v41_v9, 0 }
  0x10   :  { %v43_v11 = vsel %vm42_vm0, %v41_v9, 0 }
  0x11   :  { %v45_v12 = vand.u32 31, %v43_v11  ;;  %v44_v14 = vshrl.u32 %v43_v11, 5 }
  0x13   :  { %v46_v15 = vsub.s32 32, %v45_v12  ;;  %v48_v17 = vshll.u32 %v160_v16, %v45_v12  ;;  %v51_v19 = vshll.u32 %v161_v18, %v45_v12  ;;  %v54_v21 = vshll.u32 %v162_v20, %v45_v12 }
  0x14   :  { %v57_v23 = vshll.u32 %v163_v22, %v45_v12  ;;  %v60_v25 = vshll.u32 %v164_v24, %v45_v12  ;;  %vm63_vm1 = vcmp.lt.s32.totalorder %v44_v14, 1  ;;  %vm66_vm2 = vcmp.lt.s32.totalorder %v44_v14, 4 }
  0x15   :  { %v47_v26 = vshrl.u32 %v160_v16, %v46_v15  ;;  %v49_v27 = vshrl.u32 %v161_v18, %v46_v15  ;;  %v52_v28 = vshrl.u32 %v162_v20, %v46_v15  ;;  %v55_v29 = vshrl.u32 %v163_v22, %v46_v15 }
  0x16   :  { %v58_v30 = vshrl.u32 %v164_v24, %v46_v15  ;;  %v61_v32 = vshrl.u32 %v165_v31, %v46_v15  ;;  %vm64_vm3 = vcmp.lt.s32.totalorder %v44_v14, 2  ;;  %vm65_vm4 = vcmp.lt.s32.totalorder %v44_v14, 3 }
  0x17   :  { %v50_v34 = vor.u32 %v49_v27, %v48_v17  ;;  %v53_v35 = vor.u32 %v52_v28, %v51_v19  ;;  %v56_v36 = vor.u32 %v55_v29, %v54_v21 }
  0x18   :  { %v59_v37 = vor.u32 %v58_v30, %v57_v23  ;;  %v62_v38 = vor.u32 %v61_v32, %v60_v25 }
  0x19   :  { %v67_v39 = vsel %vm63_vm1, %v47_v26, %v50_v34  ;;  %v68_v40 = vsel %vm66_vm2, %v56_v36, 2102212464  ;;  %v71_v41 = vsel %vm63_vm1, %v50_v34, %v53_v35  ;;  %v75_v42 = vsel %vm63_vm1, %v53_v35, %v56_v36 }
  0x1a   :  { %v69_v43 = vsel %vm65_vm4, %v53_v35, %v68_v40  ;;  %v72_v44 = vsel %vm66_vm2, %v59_v37, 920167782  ;;  %v76_v45 = vsel %vm66_vm2, %v62_v38, 1326507024 }
  0x1b   :  { %v73_v46 = vsel %vm65_vm4, %v56_v36, %v72_v44  ;;  %v77_v47 = vsel %vm65_vm4, %v59_v37, %v76_v45  ;;  %v70_v48 = vsel %vm64_vm3, %v67_v39, %v69_v43 }
  0x1c   :  { %v74_v49 = vsel %vm64_vm3, %v71_v41, %v73_v46  ;;  %v78_v50 = vsel %vm64_vm3, %v75_v42, %v77_v47  ;;  %v86_v55 = vmul.u32 %v79_v33, %v70_v48 }
  0x1d   :  { %v201_v51 = vmul.u32.u64.low %v79_v33, %v78_v50  ;;  %v202_v52 = vmul.u32.u64.high %v79_v33, %v78_v50, %v201_v51  ;;  %v204_v53 = vmul.u32.u64.low %v79_v33, %v74_v49  ;;  %v205_v54 = vmul.u32.u64.high %v79_v33, %v74_v49, %v204_v53 }
  0x1f   :  { %vm88_vm5 = vc.u32 %v202_v52, %v204_v53  ;;  %v89_v56 = vadd.s32 1, %v205_v54  ;;  %v87_v3 = vadd.s32 %v204_v53, %v202_v52 }
  0x21   :  { %v90_v57 = vsel %vm88_vm5, %v89_v56, %v205_v54 }
  0x22   :  { %v91_v58 = vadd.s32 %v90_v57, %v86_v55 }
  0x24   :  { %v92_v59 = vadd.s32 536870912, %v91_v58 }
  0x26   :  { %v93_v60 = vshrl.u32 %v92_v59, 30 }
  0x28   :  { %v94_v61 = vshll.u32 %v93_v60, 30  ;;  %v117_v18 = vsub.s32 4, %v93_v60 }
  0x2a   :  { %v95_v62 = vsub.s32 %v91_v58, %v94_v61  ;;  %v118_v21 = vsel %vm33_vm7, %v117_v18, %v93_v60 }
  0x2b   :  { %v120_v23 = vsel %vm32_vm8, 0, %v118_v21 }
  0x2c   :  { %v97_v63 = vsub.s32 0, %v95_v62  ;;  %v124_v24 = vadd.s32 3, %v120_v23 }
  0x2e   :  { %v143_v0 = vmin.u32 %v97_v63, %v95_v62  ;;  %v125_v25 = vand.u32 3, %v124_v24 }
  0x30   :  { %v99_v1 = vclz %v143_v0  ;;  %vm130_vm9 = vcmp.eq.s32.totalorder %v125_v25, 2  ;;  %vm127_vm10 = vcmp.eq.s32.totalorder %v125_v25, 0  ;;  %vm126_vm11 = vcmp.lt.s32.totalorder %v125_v25, 2 }
  0x32   :  { %v144_v2 = vadd.s32 4294967294, %v99_v1 }
  0x34   :  { %vm145_vm6 = vcmp.lt.s32.totalorder %v144_v2, 0 }
  0x35   :  { %v102_v5 = vsel %vm145_vm6, 0, %v144_v2 }
  0x36   :  { %v103_v6 = vsub.s32 32, %v102_v5  ;;  %v104_v8 = vshll.u32 %v95_v62, %v102_v5  ;;  %v107_v9 = vsub.s32 4294967266, %v102_v5 }
  0x38   :  { %v105_v10 = vshrl.u32 %v87_v3, %v103_v6  ;;  %v108_v11 = vadd.s32 127, %v107_v9 }
  0x3a   :  { %v106_v12 = vor.u32 %v105_v10, %v104_v8  ;;  %v109_v13 = vshll.u32 %v108_v11, 23 }
  0x3c   :  { %v110_v14 = vor.u32 4788187, %v109_v13  ;;  %v113_v15 = vcvt.s32.f32 %v106_v12 }
  0x3e   :  { %v111_v16 = vand.u32 2147483647, %v110_v14 }
  0x40   :  { %v114_v17 = vmul.f32 %v113_v15, %v111_v16 }
  0x42   :  { %v115_v19 = vxor.u32 2147483648, %v114_v17 }
  0x44   :  { %v116_v20 = vsel %vm33_vm7, %v115_v19, %v114_v17 }
  0x45   :  { %v119_v22 = vsel %vm32_vm8, %v195_v4, %v116_v20 }
  0x46   :  { %156 = vcosq.f32 %v119_v22 }
  0x47   :  { %158 = vsinq.f32 %v119_v22 }
  0x53   :  { %v157_v26 = vpop.eup %156 }
  0x54   :  { %v159_v27 = vpop.eup %158  ;;  %v131_v28 = vxor.u32 2147483648, %v157_v26 }
  0x55   :  { %v128_v29 = vxor.u32 2147483648, %v159_v27 }
  0x56   :  { %v132_v7 = vsel %vm130_vm9, %v131_v28, %v159_v27 }
  0x57   :  { %v129_v30 = vsel %vm127_vm10, %v157_v26, %v128_v29 }
  0x58   :  { %v133_v31 = vsel %vm126_vm11, %v129_v30, %v132_v7 }
  0x59   :  { %v134_v32 = vsel %vm123_vm12, nan, %v133_v31 }
  0x5a   :  { %135 = vst [vmem:[%s222_s3] sm:$0xff] %v134_v32 }

</bundles_post_ra>
